<compile_context>
chip_gen: v5e
topology: v5e:2x2
jax: 0.10.0
libtpu: 0.0.40
codegen_flags: <defaults>
</compile_context>

<pallas_src>
import functools

import jax
import jax.numpy as jnp
from jax.experimental import pallas as pl
from jax.experimental.pallas import tpu as pltpu

LANE = 128  # pad all layer output widths to a multiple of the lane width


def _round_up(n, m=LANE):
    return ((n + m - 1) // m) * m


# ---------------------------------------------------------------------------
# Kernel
# ---------------------------------------------------------------------------
def _make_mlp_kernel(n_layers):
    """Fused MLP kernel; refs = (w0, b0, w1, b1, ..., out)."""

    def kernel(x_ref, *refs):
        o_ref = refs[-1]
        h = x_ref[...]  # (tb, in0) f32
        # Static (unrolled) layer loop -> full LLO scheduler visibility.
        for i in range(n_layers):
            w = refs[2 * i][...]        # (in_pad_i, out_pad_i) bf16, VMEM-resident
            b = refs[2 * i + 1][...]    # (1, out_pad_i) f32 -> broadcasts over rows
            # bf16 MXU operands, f32 accumulation; bias-add + tanh stay f32
            # (safe on v5e, whose VPU/EUP have no bf16; fast everywhere).
            acc = jnp.dot(h.astype(jnp.bfloat16), w,
                          preferred_element_type=jnp.float32)
            h = jnp.tanh(acc + b)
        o_ref[...] = h.astype(o_ref.dtype)

    return kernel


# ---------------------------------------------------------------------------
# Specs / tiling helpers
# ---------------------------------------------------------------------------
def _resident_spec(shape, single_buffer):
    """BlockSpec for a grid-invariant operand (weights / biases).

    Constant index_map -> request single buffering to halve its VMEM footprint.
    Falls back to the default (double-buffered) spec if pipeline_mode is not
    available in this JAX version.
    """
    idx = lambda i: (0, 0)
    if single_buffer:
        try:
            return pl.BlockSpec(shape, idx, pipeline_mode=pl.Buffered(1))
        except Exception:  # pipeline_mode / Buffered unsupported -> safe fallback
            pass
    return pl.BlockSpec(shape, idx)


def _choose_batch_tile(B, tile_b):
    if B <= 8:
        return B  # single full-extent tile (block == array dim is allowed)
    # Guarantee >=2 grid steps so v7x can shard the batch over its 2 TCs,
    # but keep tiles big (default 512 rows) to amortize the ~0.35us per-step
    # pipeline overhead and stay near the HBM roofline for large B.
    half = _round_up(-(-B // 2), 8)
    return max(8, min(tile_b, half))


# ---------------------------------------------------------------------------
# Wrapper
# ---------------------------------------------------------------------------
def mlp_forward_pallas(x, flat_padded_params, *, tile_b=512, single_buffer=True):
    """Run the fused MLP kernel.

    x:                  (B, in0) f32 (in0 is the *unpadded* input width)
    flat_padded_params: (w0, b0, w1, b1, ...) with lane-padded output widths,
                        weights bf16, biases f32.
    Returns (B, out_pad) f32; caller slices the real output columns.
    """
    B, in0 = x.shape
    n_layers = len(flat_padded_params) // 2
    out_pad = flat_padded_params[-2].shape[1]

    tb = _choose_batch_tile(B, tile_b)
    grid = (pl.cdiv(B, tb),)

    # x / out are tiled over the batch; weights & biases stay fully resident.
    in_specs = [pl.BlockSpec((tb, in0), lambda i: (i, 0))]
    for p in flat_padded_params:
        in_specs.append(_resident_spec(p.shape, single_buffer))
    out_specs = pl.BlockSpec((tb, out_pad), lambda i: (i, 0))

    # Explicit VMEM budget: double-buffered x/out tiles + (conservatively
    # double-counted) resident weights + headroom for intermediates.
    weight_bytes = sum(int(p.size) * p.dtype.itemsize for p in flat_padded_params)
    io_bytes = 2 * 4 * (tb * in0 + tb * out_pad)
    vmem_limit = int(min(64 << 20,
                         max(24 << 20, 2 * weight_bytes + io_bytes + (8 << 20))))

    # Cheap scheduling hint for XLA around the custom call.
    flops = 2 * B * sum(
        flat_padded_params[2 * i].shape[0] * flat_padded_params[2 * i].shape[1]
        for i in range(n_layers)
    )
    transcendentals = B * sum(
        flat_padded_params[2 * i].shape[1] for i in range(n_layers)
    )
    bytes_accessed = 4 * x.size + weight_bytes + 4 * B * out_pad

    return pl.pallas_call(
        _make_mlp_kernel(n_layers),
        out_shape=jax.ShapeDtypeStruct((B, out_pad), jnp.float32),
        grid_spec=pltpu.PrefetchScalarGridSpec(
            num_scalar_prefetch=0,
            grid=grid,
            in_specs=in_specs,
            out_specs=out_specs,
        ),
        compiler_params=pltpu.CompilerParams(
            dimension_semantics=("parallel",),
            vmem_limit_bytes=vmem_limit,
        ),
        cost_estimate=pl.CostEstimate(
            flops=flops,
            transcendentals=transcendentals,
            bytes_accessed=bytes_accessed,
        ),
    )(x, *flat_padded_params)


@functools.partial(jax.jit, static_argnames=("out_dim", "single_buffer"))
def mlp_apply(x, flat_padded_params, out_dim, single_buffer=True):
    out_padded = mlp_forward_pallas(x, flat_padded_params,
                                    single_buffer=single_buffer)
    # NOTE: lane-dense padded store + wrapper slice is kept on purpose while
    # the kernel is not output-write-bound (see review); fuse the consumer or
    # store out_dim columns directly if writeback ever dominates.
    return out_padded[:, :out_dim]


def _run(x, flat_padded_params, out_dim):
    """Prefer single-buffered resident weights; fall back if unsupported."""
    try:
        return jax.block_until_ready(
            mlp_apply(x, flat_padded_params, out_dim, single_buffer=True))
    except Exception:
        return jax.block_until_ready(
            mlp_apply(x, flat_padded_params, out_dim, single_buffer=False))


# ---------------------------------------------------------------------------
# Parameters
# ---------------------------------------------------------------------------
def init_mlp_params(key, net_structure):
    """nn.Linear-style init: W (out,in), b (out,), U(-1/sqrt(in), 1/sqrt(in)).

    Stored transposed -> W of shape (in, out) for the x @ W layout.
    """
    params = []
    for i in range(len(net_structure) - 1):
        fan_in, fan_out = net_structure[i], net_structure[i + 1]
        key, kw, kb = jax.random.split(key, 3)
        bound = 1.0 / jnp.sqrt(jnp.float32(fan_in))
        w = jax.random.uniform(kw, (fan_in, fan_out), jnp.float32, -bound, bound)
        b = jax.random.uniform(kb, (1, fan_out), jnp.float32, -bound, bound)
        params.append((w, b))
    return params


def pad_params(params):
    """Zero-pad layer output widths (and downstream input widths) to LANE.

    Weights are stored bf16 (MXU operands), biases stay f32. Padded columns
    produce tanh(0 + 0) = 0 activations feeding zero weight rows, so results
    are unchanged after slicing. The first layer's input width is left
    unpadded so x needs no padding.
    """
    flat = []
    prev_out_pad = None
    for i, (w, b) in enumerate(params):
        in_dim, out_dim = w.shape
        in_pad = in_dim if i == 0 else prev_out_pad
        out_pad = _round_up(out_dim)
        wp = jnp.zeros((in_pad, out_pad), jnp.float32).at[:in_dim, :out_dim].set(w)
        bp = jnp.zeros((1, out_pad), jnp.float32).at[:, :out_dim].set(b)
        flat.extend([wp.astype(jnp.bfloat16), bp])
        prev_out_pad = out_pad
    return tuple(flat)


def mlp_reference(x, params, matmul_dtype=jnp.float32):
    h = x
    for w, b in params:
        acc = jnp.dot(h.astype(matmul_dtype), w.astype(matmul_dtype),
                      preferred_element_type=jnp.float32)
        h = jnp.tanh(acc + b)
    return h


# ---------------------------------------------------------------------------
if __name__ == "__main__":
    # netStructure = [4, 32, 32, 4] — consistent with the module's small MLPs.
    net_structure = [4, 32, 32, 4]

    key = jax.random.PRNGKey(0)
    key, kp = jax.random.split(key)
    params = init_mlp_params(kp, net_structure)
    flat_padded = pad_params(params)

    # batch=8: single-tile path.  batch=40: 2-step parallel grid (v7x 2-TC
    # sharding) with a partial last tile — exercises the masked writeback.
    for batch in (8, 40):
        key, kx = jax.random.split(key)
        x = jax.random.normal(kx, (batch, net_structure[0]), jnp.float32)

        out = _run(x, flat_padded, net_structure[-1])
        assert out.shape == (batch, net_structure[-1])

        ref_bf16 = mlp_reference(x, params, matmul_dtype=jnp.bfloat16)
        ref_f32 = mlp_reference(x, params, matmul_dtype=jnp.float32)
        assert jnp.allclose(out, ref_bf16, atol=2e-3, rtol=2e-3), "bf16-path mismatch"
        assert jnp.allclose(out, ref_f32, atol=6e-2, rtol=6e-2), "f32 sanity mismatch"

    print("KERNEL_OK")
</pallas_src>

<mosaic_0001>
module attributes {stable_mosaic.version = 11 : i64} {
  func.func @kernel(%arg0: i32, %arg1: memref<8x4xf32, #tpu.memory_space<vmem>>, %arg2: memref<4x128xbf16, #tpu.memory_space<vmem>>, %arg3: memref<1x128xf32, #tpu.memory_space<vmem>>, %arg4: memref<128x128xbf16, #tpu.memory_space<vmem>>, %arg5: memref<1x128xf32, #tpu.memory_space<vmem>>, %arg6: memref<128x128xbf16, #tpu.memory_space<vmem>>, %arg7: memref<1x128xf32, #tpu.memory_space<vmem>>, %arg8: memref<8x128xf32, #tpu.memory_space<vmem>>) attributes {dimension_semantics = [#tpu.dimension_semantics<parallel>], iteration_bounds = array<i64: 1>, scalar_prefetch = 0 : i64, scratch_operands = 0 : i64, tpu.core_type = #tpu.core_type<tc>, window_params = [{transform_indices = @transform_0, window_bounds = array<i64: 8, 4>}, {pipeline_mode = #tpu.pipeline_mode<synchronous>, transform_indices = @transform_1, window_bounds = array<i64: 4, 128>}, {pipeline_mode = #tpu.pipeline_mode<synchronous>, transform_indices = @transform_2, window_bounds = array<i64: 1, 128>}, {pipeline_mode = #tpu.pipeline_mode<synchronous>, transform_indices = @transform_3, window_bounds = array<i64: 128, 128>}, {pipeline_mode = #tpu.pipeline_mode<synchronous>, transform_indices = @transform_4, window_bounds = array<i64: 1, 128>}, {pipeline_mode = #tpu.pipeline_mode<synchronous>, transform_indices = @transform_5, window_bounds = array<i64: 128, 128>}, {pipeline_mode = #tpu.pipeline_mode<synchronous>, transform_indices = @transform_6, window_bounds = array<i64: 1, 128>}, {transform_indices = @transform_7, window_bounds = array<i64: 8, 128>}]} {
    %c0 = arith.constant 0 : index
    %c0_0 = arith.constant 0 : index
    %0 = vector.load %arg1[%c0, %c0_0] : memref<8x4xf32, #tpu.memory_space<vmem>>, vector<8x4xf32>
    %c0_1 = arith.constant 0 : index
    %c0_2 = arith.constant 0 : index
    %1 = vector.load %arg2[%c0_1, %c0_2] : memref<4x128xbf16, #tpu.memory_space<vmem>>, vector<4x128xbf16>
    %c0_3 = arith.constant 0 : index
    %c0_4 = arith.constant 0 : index
    %2 = vector.load %arg3[%c0_3, %c0_4] : memref<1x128xf32, #tpu.memory_space<vmem>>, vector<1x128xf32>
    %3 = arith.truncf %0 : vector<8x4xf32> to vector<8x4xbf16>
    %cst = arith.constant dense<0.000000e+00> : vector<8x128xf32>
    %4 = tpu.matmul %3, %1, %cst {dimension_numbers = #tpu.dot_dimension_numbers<[1], [0], [0], [1], [0, 0, 1, 1], [], []>} : vector<8x4xbf16>, vector<4x128xbf16>, vector<8x128xf32> -> vector<8x128xf32>
    %5 = vector.broadcast %2 : vector<1x128xf32> to vector<8x128xf32>
    %6 = arith.addf %4, %5 : vector<8x128xf32>
    %7 = math.tanh %6 : vector<8x128xf32>
    %c0_5 = arith.constant 0 : index
    %c0_6 = arith.constant 0 : index
    %8 = vector.load %arg4[%c0_5, %c0_6] : memref<128x128xbf16, #tpu.memory_space<vmem>>, vector<128x128xbf16>
    %c0_7 = arith.constant 0 : index
    %c0_8 = arith.constant 0 : index
    %9 = vector.load %arg5[%c0_7, %c0_8] : memref<1x128xf32, #tpu.memory_space<vmem>>, vector<1x128xf32>
    %10 = arith.truncf %7 : vector<8x128xf32> to vector<8x128xbf16>
    %cst_9 = arith.constant dense<0.000000e+00> : vector<8x128xf32>
    %11 = tpu.matmul %10, %8, %cst_9 {dimension_numbers = #tpu.dot_dimension_numbers<[1], [0], [0], [1], [0, 0, 1, 1], [], []>} : vector<8x128xbf16>, vector<128x128xbf16>, vector<8x128xf32> -> vector<8x128xf32>
    %12 = vector.broadcast %9 : vector<1x128xf32> to vector<8x128xf32>
    %13 = arith.addf %11, %12 : vector<8x128xf32>
    %14 = math.tanh %13 : vector<8x128xf32>
    %c0_10 = arith.constant 0 : index
    %c0_11 = arith.constant 0 : index
    %15 = vector.load %arg6[%c0_10, %c0_11] : memref<128x128xbf16, #tpu.memory_space<vmem>>, vector<128x128xbf16>
    %c0_12 = arith.constant 0 : index
    %c0_13 = arith.constant 0 : index
    %16 = vector.load %arg7[%c0_12, %c0_13] : memref<1x128xf32, #tpu.memory_space<vmem>>, vector<1x128xf32>
    %17 = arith.truncf %14 : vector<8x128xf32> to vector<8x128xbf16>
    %cst_14 = arith.constant dense<0.000000e+00> : vector<8x128xf32>
    %18 = tpu.matmul %17, %15, %cst_14 {dimension_numbers = #tpu.dot_dimension_numbers<[1], [0], [0], [1], [0, 0, 1, 1], [], []>} : vector<8x128xbf16>, vector<128x128xbf16>, vector<8x128xf32> -> vector<8x128xf32>
    %19 = vector.broadcast %16 : vector<1x128xf32> to vector<8x128xf32>
    %20 = arith.addf %18, %19 : vector<8x128xf32>
    %21 = math.tanh %20 : vector<8x128xf32>
    %c0_15 = arith.constant 0 : index
    %c0_16 = arith.constant 0 : index
    %22 = vector.load %arg8[%c0_15, %c0_16] : memref<8x128xf32, #tpu.memory_space<vmem>>, vector<8x128xf32>
    tpu.vector_store %arg8[%c0_15, %c0_16], %21 {strides = array<i32>} : memref<8x128xf32, #tpu.memory_space<vmem>>, vector<8x128xf32>,
    return
  }
  func.func @transform_0(%arg0: i32) -> (i32, i32) {
    %c0_i32 = arith.constant 0 : i32
    %c0_i32_0 = arith.constant 0 : i32
    return %arg0, %c0_i32 : i32, i32
  }
  func.func @transform_1(%arg0: i32) -> (i32, i32) {
    %c0_i32 = arith.constant 0 : i32
    %c0_i32_0 = arith.constant 0 : i32
    %c0_i32_1 = arith.constant 0 : i32
    return %c0_i32, %c0_i32_0 : i32, i32
  }
  func.func @transform_2(%arg0: i32) -> (i32, i32) {
    %c0_i32 = arith.constant 0 : i32
    %c0_i32_0 = arith.constant 0 : i32
    %c0_i32_1 = arith.constant 0 : i32
    return %c0_i32, %c0_i32_0 : i32, i32
  }
  func.func @transform_3(%arg0: i32) -> (i32, i32) {
    %c0_i32 = arith.constant 0 : i32
    %c0_i32_0 = arith.constant 0 : i32
    %c0_i32_1 = arith.constant 0 : i32
    return %c0_i32, %c0_i32_0 : i32, i32
  }
  func.func @transform_4(%arg0: i32) -> (i32, i32) {
    %c0_i32 = arith.constant 0 : i32
    %c0_i32_0 = arith.constant 0 : i32
    %c0_i32_1 = arith.constant 0 : i32
    return %c0_i32, %c0_i32_0 : i32, i32
  }
  func.func @transform_5(%arg0: i32) -> (i32, i32) {
    %c0_i32 = arith.constant 0 : i32
    %c0_i32_0 = arith.constant 0 : i32
    %c0_i32_1 = arith.constant 0 : i32
    return %c0_i32, %c0_i32_0 : i32, i32
  }
  func.func @transform_6(%arg0: i32) -> (i32, i32) {
    %c0_i32 = arith.constant 0 : i32
    %c0_i32_0 = arith.constant 0 : i32
    %c0_i32_1 = arith.constant 0 : i32
    return %c0_i32, %c0_i32_0 : i32, i32
  }
  func.func @transform_7(%arg0: i32) -> (i32, i32) {
    %c0_i32 = arith.constant 0 : i32
    %c0_i32_0 = arith.constant 0 : i32
    return %arg0, %c0_i32 : i32, i32
  }
}

module attributes {stable_mosaic.version = 11 : i64} {
  func.func @kernel(%arg0: i32, %arg1: memref<8x4xf32, #tpu.memory_space<vmem>>, %arg2: memref<4x128xbf16, #tpu.memory_space<vmem>>, %arg3: memref<1x128xf32, #tpu.memory_space<vmem>>, %arg4: memref<128x128xbf16, #tpu.memory_space<vmem>>, %arg5: memref<1x128xf32, #tpu.memory_space<vmem>>, %arg6: memref<128x128xbf16, #tpu.memory_space<vmem>>, %arg7: memref<1x128xf32, #tpu.memory_space<vmem>>, %arg8: memref<8x128xf32, #tpu.memory_space<vmem>>) attributes {dimension_semantics = [#tpu.dimension_semantics<parallel>], iteration_bounds = array<i64: 1>, scalar_prefetch = 0 : i64, scratch_operands = 0 : i64, tpu.core_type = #tpu.core_type<tc>, window_params = [{transform_indices = @transform_0, window_bounds = array<i64: 8, 4>}, {pipeline_mode = #tpu.pipeline_mode<synchronous>, transform_indices = @transform_1, window_bounds = array<i64: 4, 128>}, {pipeline_mode = #tpu.pipeline_mode<synchronous>, transform_indices = @transform_2, window_bounds = array<i64: 1, 128>}, {pipeline_mode = #tpu.pipeline_mode<synchronous>, transform_indices = @transform_3, window_bounds = array<i64: 128, 128>}, {pipeline_mode = #tpu.pipeline_mode<synchronous>, transform_indices = @transform_4, window_bounds = array<i64: 1, 128>}, {pipeline_mode = #tpu.pipeline_mode<synchronous>, transform_indices = @transform_5, window_bounds = array<i64: 128, 128>}, {pipeline_mode = #tpu.pipeline_mode<synchronous>, transform_indices = @transform_6, window_bounds = array<i64: 1, 128>}, {transform_indices = @transform_7, window_bounds = array<i64: 8, 128>}]} {
    %c0 = arith.constant 0 : index
    %c0_0 = arith.constant 0 : index
    %0 = vector.load %arg1[%c0, %c0_0] : memref<8x4xf32, #tpu.memory_space<vmem>>, vector<8x4xf32>
    %c0_1 = arith.constant 0 : index
    %c0_2 = arith.constant 0 : index
    %1 = vector.load %arg2[%c0_1, %c0_2] : memref<4x128xbf16, #tpu.memory_space<vmem>>, vector<4x128xbf16>
    %c0_3 = arith.constant 0 : index
    %c0_4 = arith.constant 0 : index
    %2 = vector.load %arg3[%c0_3, %c0_4] : memref<1x128xf32, #tpu.memory_space<vmem>>, vector<1x128xf32>
    %3 = arith.truncf %0 : vector<8x4xf32> to vector<8x4xbf16>
    %cst = arith.constant dense<0.000000e+00> : vector<8x128xf32>
    %4 = tpu.matmul %3, %1, %cst {dimension_numbers = #tpu.dot_dimension_numbers<[1], [0], [0], [1], [0, 0, 1, 1], [], []>} : vector<8x4xbf16>, vector<4x128xbf16>, vector<8x128xf32> -> vector<8x128xf32>
    %5 = vector.broadcast %2 : vector<1x128xf32> to vector<8x128xf32>
    %6 = arith.addf %4, %5 : vector<8x128xf32>
    %7 = math.tanh %6 : vector<8x128xf32>
    %c0_5 = arith.constant 0 : index
    %c0_6 = arith.constant 0 : index
    %8 = vector.load %arg4[%c0_5, %c0_6] : memref<128x128xbf16, #tpu.memory_space<vmem>>, vector<128x128xbf16>
    %c0_7 = arith.constant 0 : index
    %c0_8 = arith.constant 0 : index
    %9 = vector.load %arg5[%c0_7, %c0_8] : memref<1x128xf32, #tpu.memory_space<vmem>>, vector<1x128xf32>
    %10 = arith.truncf %7 : vector<8x128xf32> to vector<8x128xbf16>
    %cst_9 = arith.constant dense<0.000000e+00> : vector<8x128xf32>
    %11 = tpu.matmul %10, %8, %cst_9 {dimension_numbers = #tpu.dot_dimension_numbers<[1], [0], [0], [1], [0, 0, 1, 1], [], []>} : vector<8x128xbf16>, vector<128x128xbf16>, vector<8x128xf32> -> vector<8x128xf32>
    %12 = vector.broadcast %9 : vector<1x128xf32> to vector<8x128xf32>
    %13 = arith.addf %11, %12 : vector<8x128xf32>
    %14 = math.tanh %13 : vector<8x128xf32>
    %c0_10 = arith.constant 0 : index
    %c0_11 = arith.constant 0 : index
    %15 = vector.load %arg6[%c0_10, %c0_11] : memref<128x128xbf16, #tpu.memory_space<vmem>>, vector<128x128xbf16>
    %c0_12 = arith.constant 0 : index
    %c0_13 = arith.constant 0 : index
    %16 = vector.load %arg7[%c0_12, %c0_13] : memref<1x128xf32, #tpu.memory_space<vmem>>, vector<1x128xf32>
    %17 = arith.truncf %14 : vector<8x128xf32> to vector<8x128xbf16>
    %cst_14 = arith.constant dense<0.000000e+00> : vector<8x128xf32>
    %18 = tpu.matmul %17, %15, %cst_14 {dimension_numbers = #tpu.dot_dimension_numbers<[1], [0], [0], [1], [0, 0, 1, 1], [], []>} : vector<8x128xbf16>, vector<128x128xbf16>, vector<8x128xf32> -> vector<8x128xf32>
    %19 = vector.broadcast %16 : vector<1x128xf32> to vector<8x128xf32>
    %20 = arith.addf %18, %19 : vector<8x128xf32>
    %21 = math.tanh %20 : vector<8x128xf32>
    %c0_15 = arith.constant 0 : index
    %c0_16 = arith.constant 0 : index
    %22 = vector.load %arg8[%c0_15, %c0_16] : memref<8x128xf32, #tpu.memory_space<vmem>>, vector<8x128xf32>
    tpu.vector_store %arg8[%c0_15, %c0_16], %21 {strides = array<i32>} : memref<8x128xf32, #tpu.memory_space<vmem>>, vector<8x128xf32>,
    return
  }
  func.func @transform_0(%arg0: i32) -> (i32, i32) {
    %c0_i32 = arith.constant 0 : i32
    %c0_i32_0 = arith.constant 0 : i32
    return %arg0, %c0_i32 : i32, i32
  }
  func.func @transform_1(%arg0: i32) -> (i32, i32) {
    %c0_i32 = arith.constant 0 : i32
    %c0_i32_0 = arith.constant 0 : i32
    %c0_i32_1 = arith.constant 0 : i32
    return %c0_i32, %c0_i32_0 : i32, i32
  }
  func.func @transform_2(%arg0: i32) -> (i32, i32) {
    %c0_i32 = arith.constant 0 : i32
    %c0_i32_0 = arith.constant 0 : i32
    %c0_i32_1 = arith.constant 0 : i32
    return %c0_i32, %c0_i32_0 : i32, i32
  }
  func.func @transform_3(%arg0: i32) -> (i32, i32) {
    %c0_i32 = arith.constant 0 : i32
    %c0_i32_0 = arith.constant 0 : i32
    %c0_i32_1 = arith.constant 0 : i32
    return %c0_i32, %c0_i32_0 : i32, i32
  }
  func.func @transform_4(%arg0: i32) -> (i32, i32) {
    %c0_i32 = arith.constant 0 : i32
    %c0_i32_0 = arith.constant 0 : i32
    %c0_i32_1 = arith.constant 0 : i32
    return %c0_i32, %c0_i32_0 : i32, i32
  }
  func.func @transform_5(%arg0: i32) -> (i32, i32) {
    %c0_i32 = arith.constant 0 : i32
    %c0_i32_0 = arith.constant 0 : i32
    %c0_i32_1 = arith.constant 0 : i32
    return %c0_i32, %c0_i32_0 : i32, i32
  }
  func.func @transform_6(%arg0: i32) -> (i32, i32) {
    %c0_i32 = arith.constant 0 : i32
    %c0_i32_0 = arith.constant 0 : i32
    %c0_i32_1 = arith.constant 0 : i32
    return %c0_i32, %c0_i32_0 : i32, i32
  }
  func.func @transform_7(%arg0: i32) -> (i32, i32) {
    %c0_i32 = arith.constant 0 : i32
    %c0_i32_0 = arith.constant 0 : i32
    return %arg0, %c0_i32 : i32, i32
  }
}

</mosaic_0001>

<bundles_post_ra>
// kernel: mlp_apply.1
= control target key start
LH: loop header
LB: loop body
LE: loop exit
PB: predicated region body
PF: predicated region fallthrough
CT: control target
= control target key end

     0   :  { %12 = vsyncpa [#allocation3], 0  ;;  %s475_s0 = inlined_call_operand.vmem [shape: f32[8,4], index: 0, kind: input, shape index: {}]   ;;  %s476_s1 = inlined_call_operand.vmem [shape: bf16[4,128], index: 1, kind: input, shape index: {}]   ;;  %s477_s2 = inlined_call_operand.vmem [shape: f32[1,128], index: 2, kind: input, shape index: {}]   ;;  %s478_s3 = inlined_call_operand.hbm [shape: bf16[128,128], index: 3, kind: input, shape index: {}]   ;;  %s479_s4 = inlined_call_operand.vmem [shape: f32[1,128], index: 4, kind: input, shape index: {}]   ;;  %s480_s5 = inlined_call_operand.hbm [shape: bf16[128,128], index: 5, kind: input, shape index: {}]   ;;  %s481_s6 = inlined_call_operand.vmem [shape: f32[1,128], index: 6, kind: input, shape index: {}]   ;;  %s482_s7 = inlined_call_operand.vmem [shape: f32[8,128], index: 7, kind: output, shape index: {}]  }
   0x1   :  { %s24_s26 = sshll.u32 %s478_s3, 4  ;;  %s25_s26 = int_to_ptr.hbm [resolvable:$true] %s24_s26 }
   0x2   :  { %13 = vsyncpa [#allocation5], 0  ;;  %s407_s27 = smov [#allocation2]   ;;  %s39_s8 = sshll.u32 %s480_s5, 4  ;;  %s40_s8 = int_to_ptr.hbm [resolvable:$true] %s39_s8 }
   0x3   :  { %s26_s28 = sshll.u32 %s407_s27, 4  ;;  %s408_s9 = smov 64   ;;  %s27_s28 = int_to_ptr.vmem [resolvable:$true] %s26_s28 }
   0x4   :  { %s409_s10 = smov 4   ;;  %s410_s11 = smov [#allocation4]  }
   0x5   :  { %32 = dma.hbm_to_vmem [thread:$0]  %s25_s26, 1024, %s27_s28, [#allocation3], %s408_s9, %s408_s9, %s409_s10  }
   0x6   :  { %s41_s12 = sshll.u32 %s410_s11, 4  ;;  %s42_s12 = int_to_ptr.vmem [resolvable:$true] %s41_s12 }
   0x7   :  { %47 = dma.hbm_to_vmem [thread:$0]  %s40_s8, 1024, %s42_s12, [#allocation5], %s408_s9, %s408_s9, %s409_s10  }
   0x8   :  { %403 = dma.done.wait [#allocation3], 1024  }
   0x9   :  { %404 = vsyncadd [#allocation3], 4294966272 }
   0xa   :  { %405 = dma.done.wait [#allocation5], 1024  }
   0xb   :  { %406 = vsyncadd [#allocation5], 4294966272  ;;  %vm70_vm0 = vcmask 1041408   ;;  %v60_v0 = vld [vmem:[%s476_s1] sm:$0x3]  ;;  %v333_v2 = vld [vmem:[#allocation2 + $0x38] sm:$0xff] }
   0xc   :  { %v59_v1 = vld [vmem:[%s475_s0] sm:$0xff]  ;;  %v72_v3 = vsel %vm70_vm0, %v60_v0, 0  ;;  %vm66_vm1 = vcmask 31744   ;;  %157 = vmatpush.bf16.msra.mxu1 %v333_v2  ;;  %v332_v5 = vld [vmem:[#allocation2 + $0x30] sm:$0xff]  ;;  %v331_v6 = vld [vmem:[#allocation2 + $0x28] sm:$0xff] }
   0xd   :  { %v62_v4 = vpack.c.bf16 %v59_v1, %v59_v1  ;;  %81 = vmatpush.bf16.msra.mxu0 %v72_v3  ;;  %v330_v7 = vld [vmem:[#allocation2 + $0x20] sm:$0xff]  ;;  %v329_v8 = vld [vmem:[#allocation2 + $0x18] sm:$0xff]  ;;  %v328_v9 = vld [vmem:[#allocation2 + $0x10] sm:$0xff] }
   0xe   :  { %v327_v10 = vld [vmem:[#allocation2 + $0x8] sm:$0xff]  ;;  %v326_v11 = vld [vmem:[#allocation2] sm:$0xff]  ;;  %v341_v12 = vld [vmem:[#allocation4 + $0x38] sm:$0xff] }
   0xf   :  { %240 = vmatpush.bf16.msra.mxu2 %v341_v12  ;;  %v340_v13 = vld [vmem:[#allocation4 + $0x30] sm:$0xff]  ;;  %v339_v14 = vld [vmem:[#allocation4 + $0x28] sm:$0xff]  ;;  %v338_v15 = vld [vmem:[#allocation4 + $0x20] sm:$0xff] }
  0x10   :  { %261 = vmatmul.msk.bf16.vlgmr.msra.gmra.mxu0 %vm66_vm1, %v62_v4  ;;  %158 = vmatpush.bf16.msra.mxu1 %v332_v5  ;;  %v337_v16 = vld [vmem:[#allocation4 + $0x18] sm:$0xff]  ;;  %v346_v17 = vld [vmem:[%s477_s2] ss:$0 sm:$0xff]  ;;  %v336_v23 = vld [vmem:[#allocation4 + $0x10] sm:$0xff] }
  0x11   :  { %v335_v24 = vld [vmem:[#allocation4 + $0x8] sm:$0xff]  ;;  %v334_v25 = vld [vmem:[#allocation4] sm:$0xff] }
  0x12   :  { %v347_v26 = vld [vmem:[%s479_s4] ss:$0 sm:$0xff] }
  0x13   :  { %241 = vmatpush.bf16.msra.mxu2 %v340_v13  ;;  %v348_v32 = vld [vmem:[%s481_s6] ss:$0 sm:$0xff] }
  0x14   :  { %159 = vmatpush.bf16.msra.mxu1 %v331_v6 }
  0x17   :  { %242 = vmatpush.bf16.msra.mxu2 %v339_v14 }
  0x18   :  { %160 = vmatpush.bf16.msra.mxu1 %v330_v7 }
  0x1b   :  { %243 = vmatpush.bf16.msra.mxu2 %v338_v15 }
  0x1c   :  { %161 = vmatpush.bf16.msra.mxu1 %v329_v8 }
  0x1f   :  { %244 = vmatpush.bf16.msra.mxu2 %v337_v16 }
  0x20   :  { %162 = vmatpush.bf16.msra.mxu1 %v328_v9 }
  0x23   :  { %245 = vmatpush.bf16.msra.mxu2 %v336_v23 }
  0x24   :  { %163 = vmatpush.bf16.msra.mxu1 %v327_v10 }
  0x27   :  { %246 = vmatpush.bf16.msra.mxu2 %v335_v24 }
  0x28   :  { %164 = vmatpush.bf16.msra.mxu1 %v326_v11 }
  0x2b   :  { %247 = vmatpush.bf16.msra.mxu2 %v334_v25 }
  0x8d   :  { %v83_v18 = vpop.f32.mrf.mxu0 }
  0x8e   :  { %v84_v19 = vadd.f32 %v346_v17, %v83_v18 }
  0x90   :  { %349 = vtanh.f32 %v84_v19 }
  0x95   :  { %v85_v20 = vpop.f32.mrf.mxu0 }
  0x96   :  { %v350_v21 = vpop.eup %349 }
  0x97   :  { %v105_v22 = vpack.c.bf16 %v350_v21, %v350_v21 }
  0x99   :  { %165 = vmatmul.bf16.vlgmr.msra.gmra.mxu1 %v105_v22 }
 0x116   :  { %v166_v27 = vpop.f32.mrf.mxu1 }
 0x117   :  { %v167_v28 = vadd.f32 %v347_v26, %v166_v27 }
 0x119   :  { %351 = vtanh.f32 %v167_v28 }
 0x11e   :  { %v168_v29 = vpop.f32.mrf.mxu1 }
 0x11f   :  { %v352_v30 = vpop.eup %351 }
 0x120   :  { %v188_v31 = vpack.c.bf16 %v352_v30, %v352_v30 }
 0x122   :  { %248 = vmatmul.bf16.vlgmr.msra.gmra.mxu2 %v188_v31 }
 0x1a5   :  { %v249_v33 = vpop.f32.mrf.mxu2 }
 0x1a6   :  { %v250_v34 = vadd.f32 %v348_v32, %v249_v33 }
 0x1a8   :  { %353 = vtanh.f32 %v250_v34 }
 0x1ad   :  { %v251_v35 = vpop.f32.mrf.mxu2 }
 0x1ae   :  { %v354_v36 = vpop.eup %353 }
 0x1af   :  { %254 = vst [vmem:[%s482_s7] sm:$0xff] %v354_v36 }
 0x1b0   :  { %259 = vsyncpa [#allocation3], 1 }
 0x1b1   :  { %260 = vsyncpa [#allocation5], 1 }

// kernel: mlp_apply.1
= control target key start
LH: loop header
LB: loop body
LE: loop exit
PB: predicated region body
PF: predicated region fallthrough
CT: control target
= control target key end

     0   :  { %12 = vsyncpa [#allocation3], 0  ;;  %s475_s0 = inlined_call_operand.vmem [shape: f32[8,4], index: 0, kind: input, shape index: {}]   ;;  %s476_s1 = inlined_call_operand.vmem [shape: bf16[4,128], index: 1, kind: input, shape index: {}]   ;;  %s477_s2 = inlined_call_operand.vmem [shape: f32[1,128], index: 2, kind: input, shape index: {}]   ;;  %s478_s3 = inlined_call_operand.hbm [shape: bf16[128,128], index: 3, kind: input, shape index: {}]   ;;  %s479_s4 = inlined_call_operand.vmem [shape: f32[1,128], index: 4, kind: input, shape index: {}]   ;;  %s480_s5 = inlined_call_operand.hbm [shape: bf16[128,128], index: 5, kind: input, shape index: {}]   ;;  %s481_s6 = inlined_call_operand.vmem [shape: f32[1,128], index: 6, kind: input, shape index: {}]   ;;  %s482_s7 = inlined_call_operand.vmem [shape: f32[8,128], index: 7, kind: output, shape index: {}]  }
   0x1   :  { %s24_s26 = sshll.u32 %s478_s3, 4  ;;  %s25_s26 = int_to_ptr.hbm [resolvable:$true] %s24_s26 }
   0x2   :  { %13 = vsyncpa [#allocation5], 0  ;;  %s407_s27 = smov [#allocation2]   ;;  %s39_s8 = sshll.u32 %s480_s5, 4  ;;  %s40_s8 = int_to_ptr.hbm [resolvable:$true] %s39_s8 }
   0x3   :  { %s26_s28 = sshll.u32 %s407_s27, 4  ;;  %s408_s9 = smov 64   ;;  %s27_s28 = int_to_ptr.vmem [resolvable:$true] %s26_s28 }
   0x4   :  { %s409_s10 = smov 4   ;;  %s410_s11 = smov [#allocation4]  }
   0x5   :  { %32 = dma.hbm_to_vmem [thread:$0]  %s25_s26, 1024, %s27_s28, [#allocation3], %s408_s9, %s408_s9, %s409_s10  }
   0x6   :  { %s41_s12 = sshll.u32 %s410_s11, 4  ;;  %s42_s12 = int_to_ptr.vmem [resolvable:$true] %s41_s12 }
   0x7   :  { %47 = dma.hbm_to_vmem [thread:$0]  %s40_s8, 1024, %s42_s12, [#allocation5], %s408_s9, %s408_s9, %s409_s10  }
   0x8   :  { %403 = dma.done.wait [#allocation3], 1024  }
   0x9   :  { %404 = vsyncadd [#allocation3], 4294966272 }
   0xa   :  { %405 = dma.done.wait [#allocation5], 1024  }
   0xb   :  { %406 = vsyncadd [#allocation5], 4294966272  ;;  %vm70_vm0 = vcmask 1041408   ;;  %v60_v0 = vld [vmem:[%s476_s1] sm:$0x3]  ;;  %v333_v2 = vld [vmem:[#allocation2 + $0x38] sm:$0xff] }
   0xc   :  { %v59_v1 = vld [vmem:[%s475_s0] sm:$0xff]  ;;  %v72_v3 = vsel %vm70_vm0, %v60_v0, 0  ;;  %vm66_vm1 = vcmask 31744   ;;  %157 = vmatpush.bf16.msra.mxu1 %v333_v2  ;;  %v332_v5 = vld [vmem:[#allocation2 + $0x30] sm:$0xff]  ;;  %v331_v6 = vld [vmem:[#allocation2 + $0x28] sm:$0xff] }
   0xd   :  { %v62_v4 = vpack.c.bf16 %v59_v1, %v59_v1  ;;  %81 = vmatpush.bf16.msra.mxu0 %v72_v3  ;;  %v330_v7 = vld [vmem:[#allocation2 + $0x20] sm:$0xff]  ;;  %v329_v8 = vld [vmem:[#allocation2 + $0x18] sm:$0xff]  ;;  %v328_v9 = vld [vmem:[#allocation2 + $0x10] sm:$0xff] }
   0xe   :  { %v327_v10 = vld [vmem:[#allocation2 + $0x8] sm:$0xff]  ;;  %v326_v11 = vld [vmem:[#allocation2] sm:$0xff]  ;;  %v341_v12 = vld [vmem:[#allocation4 + $0x38] sm:$0xff] }
   0xf   :  { %240 = vmatpush.bf16.msra.mxu2 %v341_v12  ;;  %v340_v13 = vld [vmem:[#allocation4 + $0x30] sm:$0xff]  ;;  %v339_v14 = vld [vmem:[#allocation4 + $0x28] sm:$0xff]  ;;  %v338_v15 = vld [vmem:[#allocation4 + $0x20] sm:$0xff] }
  0x10   :  { %261 = vmatmul.msk.bf16.vlgmr.msra.gmra.mxu0 %vm66_vm1, %v62_v4  ;;  %158 = vmatpush.bf16.msra.mxu1 %v332_v5  ;;  %v337_v16 = vld [vmem:[#allocation4 + $0x18] sm:$0xff]  ;;  %v346_v17 = vld [vmem:[%s477_s2] ss:$0 sm:$0xff]  ;;  %v336_v23 = vld [vmem:[#allocation4 + $0x10] sm:$0xff] }
  0x11   :  { %v335_v24 = vld [vmem:[#allocation4 + $0x8] sm:$0xff]  ;;  %v334_v25 = vld [vmem:[#allocation4] sm:$0xff] }
  0x12   :  { %v347_v26 = vld [vmem:[%s479_s4] ss:$0 sm:$0xff] }
  0x13   :  { %241 = vmatpush.bf16.msra.mxu2 %v340_v13  ;;  %v348_v32 = vld [vmem:[%s481_s6] ss:$0 sm:$0xff] }
  0x14   :  { %159 = vmatpush.bf16.msra.mxu1 %v331_v6 }
  0x17   :  { %242 = vmatpush.bf16.msra.mxu2 %v339_v14 }
  0x18   :  { %160 = vmatpush.bf16.msra.mxu1 %v330_v7 }
  0x1b   :  { %243 = vmatpush.bf16.msra.mxu2 %v338_v15 }
  0x1c   :  { %161 = vmatpush.bf16.msra.mxu1 %v329_v8 }
  0x1f   :  { %244 = vmatpush.bf16.msra.mxu2 %v337_v16 }
  0x20   :  { %162 = vmatpush.bf16.msra.mxu1 %v328_v9 }
  0x23   :  { %245 = vmatpush.bf16.msra.mxu2 %v336_v23 }
  0x24   :  { %163 = vmatpush.bf16.msra.mxu1 %v327_v10 }
  0x27   :  { %246 = vmatpush.bf16.msra.mxu2 %v335_v24 }
  0x28   :  { %164 = vmatpush.bf16.msra.mxu1 %v326_v11 }
  0x2b   :  { %247 = vmatpush.bf16.msra.mxu2 %v334_v25 }
  0x8d   :  { %v83_v18 = vpop.f32.mrf.mxu0 }
  0x8e   :  { %v84_v19 = vadd.f32 %v346_v17, %v83_v18 }
  0x90   :  { %349 = vtanh.f32 %v84_v19 }
  0x95   :  { %v85_v20 = vpop.f32.mrf.mxu0 }
  0x96   :  { %v350_v21 = vpop.eup %349 }
  0x97   :  { %v105_v22 = vpack.c.bf16 %v350_v21, %v350_v21 }
  0x99   :  { %165 = vmatmul.bf16.vlgmr.msra.gmra.mxu1 %v105_v22 }
 0x116   :  { %v166_v27 = vpop.f32.mrf.mxu1 }
 0x117   :  { %v167_v28 = vadd.f32 %v347_v26, %v166_v27 }
 0x119   :  { %351 = vtanh.f32 %v167_v28 }
 0x11e   :  { %v168_v29 = vpop.f32.mrf.mxu1 }
 0x11f   :  { %v352_v30 = vpop.eup %351 }
 0x120   :  { %v188_v31 = vpack.c.bf16 %v352_v30, %v352_v30 }
 0x122   :  { %248 = vmatmul.bf16.vlgmr.msra.gmra.mxu2 %v188_v31 }
 0x1a5   :  { %v249_v33 = vpop.f32.mrf.mxu2 }
 0x1a6   :  { %v250_v34 = vadd.f32 %v348_v32, %v249_v33 }
 0x1a8   :  { %353 = vtanh.f32 %v250_v34 }
 0x1ad   :  { %v251_v35 = vpop.f32.mrf.mxu2 }
 0x1ae   :  { %v354_v36 = vpop.eup %353 }
 0x1af   :  { %254 = vst [vmem:[%s482_s7] sm:$0xff] %v354_v36 }
 0x1b0   :  { %259 = vsyncpa [#allocation3], 1 }
 0x1b1   :  { %260 = vsyncpa [#allocation5], 1 }

</bundles_post_ra>
